<compile_context>
chip_gen: v7x
topology: tpu7x:2x2x1
jax: 0.10.0
libtpu: 0.0.40
codegen_flags: <defaults>
</compile_context>

<pallas_src>
import jax
import jax.numpy as jnp
from jax.experimental import pallas as pl
from jax.experimental.pallas import tpu as pltpu


def _round_up(v, m):
    return ((v + m - 1) // m) * m


def drnn_kernel(x2_ref, wih_ref, whh_ref, bcomb_ref, bhhn_ref,
                wlin_ref, blin_ref, out_ref):
    # x2_ref   : (T*BP, I)  time-major rows (row t*BP + b == x[b, t, :]),
    #                       batch padded to BP (multiple of 8) with zero rows.
    # wih_ref  : (I,  GL)   input->gate weights, gates [r|z|n] at lanes 0/H/2H.
    # whh_ref  : (H,  GL)   hidden->gate weights, same packed layout.
    # bcomb_ref: (1,  GL)   folded bias: (b_ih + b_hh) for r,z ; b_ih for n.
    # bhhn_ref : (BP, H)    hidden-side n-gate bias, pre-broadcast (hoisted).
    # wlin_ref : (H,  OP)   final Linear weight, lane-padded output.
    # blin_ref : (1,  OP)
    # out_ref  : (BP, OP)   sigmoid(Linear(h_T)), lane-dense.
    TB = x2_ref.shape[0]
    BP, OP = out_ref.shape
    H = whh_ref.shape[0]
    T = TB // BP

    # --- hoisted input projection: one MXU matmul for all timesteps ----------
    gi_all = jnp.dot(x2_ref[...], wih_ref[...],
                     preferred_element_type=jnp.float32) + bcomb_ref[...]   # (T*BP, GL)

    w_hh = whh_ref[...]
    b_hh_n = bhhn_ref[...]        # already (BP, H): no per-step broadcast_in_dim

    # --- fully unrolled recurrence: only h @ w_hh is on the serial chain -----
    # NOTE: holding w_hh resident in the MXU across steps (matmul_push_rhs /
    # matmul_acc_lhs / matmul_pop) would shave the per-step weight reload; kept
    # as plain jnp.dot here — the RHS is already a single 128-lane tile.
    h = jnp.zeros((BP, H), jnp.float32)
    for t in range(T):
        gi = gi_all[t * BP:(t + 1) * BP, :]                           # (BP, GL), sublane-aligned
        gh = jnp.dot(h, w_hh, preferred_element_type=jnp.float32)     # (BP, GL)
        s = gi + gh                                                   # full-width VPU add
        r = jax.nn.sigmoid(s[:, 0:H])
        z = jax.nn.sigmoid(s[:, H:2 * H])
        n = jnp.tanh(gi[:, 2 * H:3 * H] + r * (gh[:, 2 * H:3 * H] + b_hh_n))
        h = (1.0 - z) * n + z * h

    # --- final Linear + Sigmoid on h_T ---------------------------------------
    logits = jnp.dot(h, wlin_ref[...],
                     preferred_element_type=jnp.float32) + blin_ref[...]    # (BP, OP)
    out_ref[...] = jax.nn.sigmoid(logits)


def drnn_forward(x, w_ih, w_hh, b_ih, b_hh, w_lin, b_lin):
    """x: (B, T, I) batch_first; params in PyTorch GRU/Linear layout.

    w_ih: (3H, I), w_hh: (3H, H), b_ih/b_hh: (3H,), w_lin: (I, H), b_lin: (I,).
    Returns sigmoid(Linear(h_T)), shape (B, I), float32.
    """
    B, T, I = x.shape
    H = w_hh.shape[1]
    BP = _round_up(B, 8)              # sublane-padded batch
    GL = _round_up(3 * H, 128)        # packed gate slab [r|z|n] at lanes 0/H/2H
    OP = _round_up(I, 128)            # lane-padded output width

    f32 = jnp.float32

    # time-major, batch padded to BP rows: row t*BP + b == x[b, t, :]
    xt = jnp.transpose(x, (1, 0, 2)).astype(f32)          # (T, B, I)
    xt = jnp.pad(xt, ((0, 0), (0, BP - B), (0, 0)))       # (T, BP, I)
    x2 = xt.reshape(T * BP, I)

    def pad2(a, rows, cols):
        a = a.astype(f32)
        return jnp.pad(a, ((0, rows - a.shape[0]), (0, cols - a.shape[1])))

    def pad1(v, cols):
        return jnp.pad(v.astype(f32), (0, cols - v.shape[0]))

    # PyTorch GRU weight layout (3H, K) with gate rows [r|z|n] transposes
    # directly into the packed (K, GL) layout with gates at lane offsets 0/H/2H.
    wih_p = pad2(w_ih.T, I, GL)                           # (I, GL)
    whh_p = pad2(w_hh.T, H, GL)                           # (H, GL)

    # Folded biases: (b_ih + b_hh) for r,z; b_ih only for n (b_hh_n scaled by r).
    bcomb = pad1(jnp.concatenate([b_ih[:2 * H] + b_hh[:2 * H], b_ih[2 * H:]]),
                 GL).reshape(1, GL)
    # Hidden-side n-gate bias, pre-broadcast to BP rows (hoists broadcast_in_dim
    # out of the kernel's unrolled loop entirely).
    bhh_n = jnp.broadcast_to(b_hh[2 * H:].astype(f32).reshape(1, H), (BP, H))

    wlin_p = pad2(w_lin.T, H, OP)                         # (H, OP)
    blin_p = pad1(b_lin, OP).reshape(1, OP)               # (1, OP)

    full = lambda shape: pl.BlockSpec(
        shape, lambda: (0,) * len(shape), memory_space=pltpu.MemorySpace.VMEM)

    # Advisory cost estimate so XLA schedules sensibly around this tiny kernel.
    flops = (2 * T * BP * I * GL            # hoisted input projection
             + 2 * T * BP * H * GL          # recurrent h @ W_hh
             + 2 * BP * H * OP              # final Linear
             + 10 * T * BP * GL)            # gate elementwise math
    transcendentals = T * BP * 3 * H + BP * OP
    bytes_accessed = int(sum(int(a.size) * 4 for a in
                             (x2, wih_p, whh_p, bcomb, bhh_n, wlin_p, blin_p))
                         + BP * OP * 4)

    out_p = pl.pallas_call(
        drnn_kernel,
        out_shape=jax.ShapeDtypeStruct((BP, OP), jnp.float32),
        in_specs=[
            full((T * BP, I)),
            full((I, GL)),
            full((H, GL)),
            full((1, GL)),
            full((BP, H)),
            full((H, OP)),
            full((1, OP)),
        ],
        out_specs=full((BP, OP)),
        cost_estimate=pl.CostEstimate(flops=flops,
                                      transcendentals=transcendentals,
                                      bytes_accessed=bytes_accessed),
    )(x2, wih_p, whh_p, bcomb, bhh_n, wlin_p, blin_p)

    return out_p[:B, :I]


def drnn_reference(x, w_ih, w_hh, b_ih, b_hh, w_lin, b_lin):
    """Pure-JAX reference mimicking torch.nn.GRU (batch_first) + Linear + Sigmoid."""
    B, T, I = x.shape
    H = w_hh.shape[1]
    h = jnp.zeros((B, H), jnp.float32)
    for t in range(T):
        x_t = x[:, t, :]
        gi = x_t @ w_ih.T + b_ih
        gh = h @ w_hh.T + b_hh
        r = jax.nn.sigmoid(gi[:, :H] + gh[:, :H])
        z = jax.nn.sigmoid(gi[:, H:2 * H] + gh[:, H:2 * H])
        n = jnp.tanh(gi[:, 2 * H:] + r * gh[:, 2 * H:])
        h = (1.0 - z) * n + z * h
    return jax.nn.sigmoid(h @ w_lin.T + b_lin)


if __name__ == "__main__":
    # Small shapes consistent with the module: batch=2, seq=8,
    # input_size=16, hidden_size=32.
    B, T, I, H = 2, 8, 16, 32

    key = jax.random.PRNGKey(0)
    ks = jax.random.split(key, 8)
    bound_gru = 1.0 / jnp.sqrt(H)
    bound_lin = 1.0 / jnp.sqrt(H)

    x = jax.random.normal(ks[0], (B, T, I), dtype=jnp.float32)
    w_ih = jax.random.uniform(ks[1], (3 * H, I), jnp.float32, -bound_gru, bound_gru)
    w_hh = jax.random.uniform(ks[2], (3 * H, H), jnp.float32, -bound_gru, bound_gru)
    b_ih = jax.random.uniform(ks[3], (3 * H,), jnp.float32, -bound_gru, bound_gru)
    b_hh = jax.random.uniform(ks[4], (3 * H,), jnp.float32, -bound_gru, bound_gru)
    w_lin = jax.random.uniform(ks[5], (I, H), jnp.float32, -bound_lin, bound_lin)
    b_lin = jax.random.uniform(ks[6], (I,), jnp.float32, -bound_lin, bound_lin)

    out = drnn_forward(x, w_ih, w_hh, b_ih, b_hh, w_lin, b_lin)
    out = jax.block_until_ready(out)

    ref = drnn_reference(x, w_ih, w_hh, b_ih, b_hh, w_lin, b_lin)
    assert out.shape == (B, I)
    assert jnp.allclose(out, ref, atol=1e-5, rtol=1e-5)

    print("KERNEL_OK")
</pallas_src>

<mosaic_0001>
module attributes {stable_mosaic.version = 11 : i64} {
  func.func @drnn_kernel(%arg0: memref<64x16xf32, #tpu.memory_space<vmem>>, %arg1: memref<16x128xf32, #tpu.memory_space<vmem>>, %arg2: memref<32x128xf32, #tpu.memory_space<vmem>>, %arg3: memref<1x128xf32, #tpu.memory_space<vmem>>, %arg4: memref<8x32xf32, #tpu.memory_space<vmem>>, %arg5: memref<32x128xf32, #tpu.memory_space<vmem>>, %arg6: memref<1x128xf32, #tpu.memory_space<vmem>>, %arg7: memref<8x128xf32, #tpu.memory_space<vmem>>) attributes {dimension_semantics = [], scalar_prefetch = 0 : i64, scratch_operands = 0 : i64, tpu.core_type = #tpu.core_type<tc>} {
    %c0 = arith.constant 0 : index
    %c0_0 = arith.constant 0 : index
    %0 = vector.load %arg0[%c0, %c0_0] : memref<64x16xf32, #tpu.memory_space<vmem>>, vector<64x16xf32>
    %c0_1 = arith.constant 0 : index
    %c0_2 = arith.constant 0 : index
    %1 = vector.load %arg1[%c0_1, %c0_2] : memref<16x128xf32, #tpu.memory_space<vmem>>, vector<16x128xf32>
    %cst = arith.constant dense<0.000000e+00> : vector<64x128xf32>
    %2 = tpu.matmul %0, %1, %cst {dimension_numbers = #tpu.dot_dimension_numbers<[1], [0], [0], [1], [0, 0, 1, 1], [], []>} : vector<64x16xf32>, vector<16x128xf32>, vector<64x128xf32> -> vector<64x128xf32>
    %c0_3 = arith.constant 0 : index
    %c0_4 = arith.constant 0 : index
    %3 = vector.load %arg3[%c0_3, %c0_4] : memref<1x128xf32, #tpu.memory_space<vmem>>, vector<1x128xf32>
    %4 = vector.broadcast %3 : vector<1x128xf32> to vector<64x128xf32>
    %5 = arith.addf %2, %4 : vector<64x128xf32>
    %c0_5 = arith.constant 0 : index
    %c0_6 = arith.constant 0 : index
    %6 = vector.load %arg2[%c0_5, %c0_6] : memref<32x128xf32, #tpu.memory_space<vmem>>, vector<32x128xf32>
    %c0_7 = arith.constant 0 : index
    %c0_8 = arith.constant 0 : index
    %7 = vector.load %arg4[%c0_7, %c0_8] : memref<8x32xf32, #tpu.memory_space<vmem>>, vector<8x32xf32>
    %cst_9 = arith.constant 0.000000e+00 : f32
    %8 = vector.broadcast %cst_9 : f32 to vector<8x32xf32>
    %9 = vector.extract_strided_slice %5 {offsets = [0, 0], sizes = [8, 128], strides = [1, 1]} : vector<64x128xf32> to vector<8x128xf32>
    %cst_10 = arith.constant dense<0.000000e+00> : vector<8x128xf32>
    %10 = tpu.matmul %8, %6, %cst_10 {dimension_numbers = #tpu.dot_dimension_numbers<[1], [0], [0], [1], [0, 0, 1, 1], [], []>} : vector<8x32xf32>, vector<32x128xf32>, vector<8x128xf32> -> vector<8x128xf32>
    %11 = arith.addf %9, %10 : vector<8x128xf32>
    %12 = vector.extract_strided_slice %11 {offsets = [0, 0], sizes = [8, 32], strides = [1, 1]} : vector<8x128xf32> to vector<8x32xf32>
    %13 = arith.negf %12 : vector<8x32xf32>
    %14 = math.exp %13 : vector<8x32xf32>
    %cst_11 = arith.constant 1.000000e+00 : f32
    %15 = vector.broadcast %cst_11 : f32 to vector<8x32xf32>
    %16 = arith.addf %15, %14 : vector<8x32xf32>
    %17 = arith.divf %15, %16 : vector<8x32xf32>
    %18 = vector.extract_strided_slice %11 {offsets = [0, 32], sizes = [8, 32], strides = [1, 1]} : vector<8x128xf32> to vector<8x32xf32>
    %19 = arith.negf %18 : vector<8x32xf32>
    %20 = math.exp %19 : vector<8x32xf32>
    %cst_12 = arith.constant 1.000000e+00 : f32
    %21 = vector.broadcast %cst_12 : f32 to vector<8x32xf32>
    %22 = arith.addf %21, %20 : vector<8x32xf32>
    %23 = arith.divf %21, %22 : vector<8x32xf32>
    %24 = vector.extract_strided_slice %9 {offsets = [0, 64], sizes = [8, 32], strides = [1, 1]} : vector<8x128xf32> to vector<8x32xf32>
    %25 = vector.extract_strided_slice %10 {offsets = [0, 64], sizes = [8, 32], strides = [1, 1]} : vector<8x128xf32> to vector<8x32xf32>
    %26 = arith.addf %25, %7 : vector<8x32xf32>
    %27 = arith.mulf %17, %26 : vector<8x32xf32>
    %28 = arith.addf %24, %27 : vector<8x32xf32>
    %29 = math.tanh %28 : vector<8x32xf32>
    %cst_13 = arith.constant 1.000000e+00 : f32
    %30 = vector.broadcast %cst_13 : f32 to vector<8x32xf32>
    %31 = arith.subf %30, %23 : vector<8x32xf32>
    %32 = arith.mulf %31, %29 : vector<8x32xf32>
    %33 = arith.mulf %23, %8 : vector<8x32xf32>
    %34 = arith.addf %32, %33 : vector<8x32xf32>
    %35 = vector.extract_strided_slice %5 {offsets = [8, 0], sizes = [8, 128], strides = [1, 1]} : vector<64x128xf32> to vector<8x128xf32>
    %cst_14 = arith.constant dense<0.000000e+00> : vector<8x128xf32>
    %36 = tpu.matmul %34, %6, %cst_14 {dimension_numbers = #tpu.dot_dimension_numbers<[1], [0], [0], [1], [0, 0, 1, 1], [], []>} : vector<8x32xf32>, vector<32x128xf32>, vector<8x128xf32> -> vector<8x128xf32>
    %37 = arith.addf %35, %36 : vector<8x128xf32>
    %38 = vector.extract_strided_slice %37 {offsets = [0, 0], sizes = [8, 32], strides = [1, 1]} : vector<8x128xf32> to vector<8x32xf32>
    %39 = arith.negf %38 : vector<8x32xf32>
    %40 = math.exp %39 : vector<8x32xf32>
    %cst_15 = arith.constant 1.000000e+00 : f32
    %41 = vector.broadcast %cst_15 : f32 to vector<8x32xf32>
    %42 = arith.addf %41, %40 : vector<8x32xf32>
    %43 = arith.divf %41, %42 : vector<8x32xf32>
    %44 = vector.extract_strided_slice %37 {offsets = [0, 32], sizes = [8, 32], strides = [1, 1]} : vector<8x128xf32> to vector<8x32xf32>
    %45 = arith.negf %44 : vector<8x32xf32>
    %46 = math.exp %45 : vector<8x32xf32>
    %cst_16 = arith.constant 1.000000e+00 : f32
    %47 = vector.broadcast %cst_16 : f32 to vector<8x32xf32>
    %48 = arith.addf %47, %46 : vector<8x32xf32>
    %49 = arith.divf %47, %48 : vector<8x32xf32>
    %50 = vector.extract_strided_slice %35 {offsets = [0, 64], sizes = [8, 32], strides = [1, 1]} : vector<8x128xf32> to vector<8x32xf32>
    %51 = vector.extract_strided_slice %36 {offsets = [0, 64], sizes = [8, 32], strides = [1, 1]} : vector<8x128xf32> to vector<8x32xf32>
    %52 = arith.addf %51, %7 : vector<8x32xf32>
    %53 = arith.mulf %43, %52 : vector<8x32xf32>
    %54 = arith.addf %50, %53 : vector<8x32xf32>
    %55 = math.tanh %54 : vector<8x32xf32>
    %cst_17 = arith.constant 1.000000e+00 : f32
    %56 = vector.broadcast %cst_17 : f32 to vector<8x32xf32>
    %57 = arith.subf %56, %49 : vector<8x32xf32>
    %58 = arith.mulf %57, %55 : vector<8x32xf32>
    %59 = arith.mulf %49, %34 : vector<8x32xf32>
    %60 = arith.addf %58, %59 : vector<8x32xf32>
    %61 = vector.extract_strided_slice %5 {offsets = [16, 0], sizes = [8, 128], strides = [1, 1]} : vector<64x128xf32> to vector<8x128xf32>
    %cst_18 = arith.constant dense<0.000000e+00> : vector<8x128xf32>
    %62 = tpu.matmul %60, %6, %cst_18 {dimension_numbers = #tpu.dot_dimension_numbers<[1], [0], [0], [1], [0, 0, 1, 1], [], []>} : vector<8x32xf32>, vector<32x128xf32>, vector<8x128xf32> -> vector<8x128xf32>
    %63 = arith.addf %61, %62 : vector<8x128xf32>
    %64 = vector.extract_strided_slice %63 {offsets = [0, 0], sizes = [8, 32], strides = [1, 1]} : vector<8x128xf32> to vector<8x32xf32>
    %65 = arith.negf %64 : vector<8x32xf32>
    %66 = math.exp %65 : vector<8x32xf32>
    %cst_19 = arith.constant 1.000000e+00 : f32
    %67 = vector.broadcast %cst_19 : f32 to vector<8x32xf32>
    %68 = arith.addf %67, %66 : vector<8x32xf32>
    %69 = arith.divf %67, %68 : vector<8x32xf32>
    %70 = vector.extract_strided_slice %63 {offsets = [0, 32], sizes = [8, 32], strides = [1, 1]} : vector<8x128xf32> to vector<8x32xf32>
    %71 = arith.negf %70 : vector<8x32xf32>
    %72 = math.exp %71 : vector<8x32xf32>
    %cst_20 = arith.constant 1.000000e+00 : f32
    %73 = vector.broadcast %cst_20 : f32 to vector<8x32xf32>
    %74 = arith.addf %73, %72 : vector<8x32xf32>
    %75 = arith.divf %73, %74 : vector<8x32xf32>
    %76 = vector.extract_strided_slice %61 {offsets = [0, 64], sizes = [8, 32], strides = [1, 1]} : vector<8x128xf32> to vector<8x32xf32>
    %77 = vector.extract_strided_slice %62 {offsets = [0, 64], sizes = [8, 32], strides = [1, 1]} : vector<8x128xf32> to vector<8x32xf32>
    %78 = arith.addf %77, %7 : vector<8x32xf32>
    %79 = arith.mulf %69, %78 : vector<8x32xf32>
    %80 = arith.addf %76, %79 : vector<8x32xf32>
    %81 = math.tanh %80 : vector<8x32xf32>
    %cst_21 = arith.constant 1.000000e+00 : f32
    %82 = vector.broadcast %cst_21 : f32 to vector<8x32xf32>
    %83 = arith.subf %82, %75 : vector<8x32xf32>
    %84 = arith.mulf %83, %81 : vector<8x32xf32>
    %85 = arith.mulf %75, %60 : vector<8x32xf32>
    %86 = arith.addf %84, %85 : vector<8x32xf32>
    %87 = vector.extract_strided_slice %5 {offsets = [24, 0], sizes = [8, 128], strides = [1, 1]} : vector<64x128xf32> to vector<8x128xf32>
    %cst_22 = arith.constant dense<0.000000e+00> : vector<8x128xf32>
    %88 = tpu.matmul %86, %6, %cst_22 {dimension_numbers = #tpu.dot_dimension_numbers<[1], [0], [0], [1], [0, 0, 1, 1], [], []>} : vector<8x32xf32>, vector<32x128xf32>, vector<8x128xf32> -> vector<8x128xf32>
    %89 = arith.addf %87, %88 : vector<8x128xf32>
    %90 = vector.extract_strided_slice %89 {offsets = [0, 0], sizes = [8, 32], strides = [1, 1]} : vector<8x128xf32> to vector<8x32xf32>
    %91 = arith.negf %90 : vector<8x32xf32>
    %92 = math.exp %91 : vector<8x32xf32>
    %cst_23 = arith.constant 1.000000e+00 : f32
    %93 = vector.broadcast %cst_23 : f32 to vector<8x32xf32>
    %94 = arith.addf %93, %92 : vector<8x32xf32>
    %95 = arith.divf %93, %94 : vector<8x32xf32>
    %96 = vector.extract_strided_slice %89 {offsets = [0, 32], sizes = [8, 32], strides = [1, 1]} : vector<8x128xf32> to vector<8x32xf32>
    %97 = arith.negf %96 : vector<8x32xf32>
    %98 = math.exp %97 : vector<8x32xf32>
    %cst_24 = arith.constant 1.000000e+00 : f32
    %99 = vector.broadcast %cst_24 : f32 to vector<8x32xf32>
    %100 = arith.addf %99, %98 : vector<8x32xf32>
    %101 = arith.divf %99, %100 : vector<8x32xf32>
    %102 = vector.extract_strided_slice %87 {offsets = [0, 64], sizes = [8, 32], strides = [1, 1]} : vector<8x128xf32> to vector<8x32xf32>
    %103 = vector.extract_strided_slice %88 {offsets = [0, 64], sizes = [8, 32], strides = [1, 1]} : vector<8x128xf32> to vector<8x32xf32>
    %104 = arith.addf %103, %7 : vector<8x32xf32>
    %105 = arith.mulf %95, %104 : vector<8x32xf32>
    %106 = arith.addf %102, %105 : vector<8x32xf32>
    %107 = math.tanh %106 : vector<8x32xf32>
    %cst_25 = arith.constant 1.000000e+00 : f32
    %108 = vector.broadcast %cst_25 : f32 to vector<8x32xf32>
    %109 = arith.subf %108, %101 : vector<8x32xf32>
    %110 = arith.mulf %109, %107 : vector<8x32xf32>
    %111 = arith.mulf %101, %86 : vector<8x32xf32>
    %112 = arith.addf %110, %111 : vector<8x32xf32>
    %113 = vector.extract_strided_slice %5 {offsets = [32, 0], sizes = [8, 128], strides = [1, 1]} : vector<64x128xf32> to vector<8x128xf32>
    %cst_26 = arith.constant dense<0.000000e+00> : vector<8x128xf32>
    %114 = tpu.matmul %112, %6, %cst_26 {dimension_numbers = #tpu.dot_dimension_numbers<[1], [0], [0], [1], [0, 0, 1, 1], [], []>} : vector<8x32xf32>, vector<32x128xf32>, vector<8x128xf32> -> vector<8x128xf32>
    %115 = arith.addf %113, %114 : vector<8x128xf32>
    %116 = vector.extract_strided_slice %115 {offsets = [0, 0], sizes = [8, 32], strides = [1, 1]} : vector<8x128xf32> to vector<8x32xf32>
    %117 = arith.negf %116 : vector<8x32xf32>
    %118 = math.exp %117 : vector<8x32xf32>
    %cst_27 = arith.constant 1.000000e+00 : f32
    %119 = vector.broadcast %cst_27 : f32 to vector<8x32xf32>
    %120 = arith.addf %119, %118 : vector<8x32xf32>
    %121 = arith.divf %119, %120 : vector<8x32xf32>
    %122 = vector.extract_strided_slice %115 {offsets = [0, 32], sizes = [8, 32], strides = [1, 1]} : vector<8x128xf32> to vector<8x32xf32>
    %123 = arith.negf %122 : vector<8x32xf32>
    %124 = math.exp %123 : vector<8x32xf32>
    %cst_28 = arith.constant 1.000000e+00 : f32
    %125 = vector.broadcast %cst_28 : f32 to vector<8x32xf32>
    %126 = arith.addf %125, %124 : vector<8x32xf32>
    %127 = arith.divf %125, %126 : vector<8x32xf32>
    %128 = vector.extract_strided_slice %113 {offsets = [0, 64], sizes = [8, 32], strides = [1, 1]} : vector<8x128xf32> to vector<8x32xf32>
    %129 = vector.extract_strided_slice %114 {offsets = [0, 64], sizes = [8, 32], strides = [1, 1]} : vector<8x128xf32> to vector<8x32xf32>
    %130 = arith.addf %129, %7 : vector<8x32xf32>
    %131 = arith.mulf %121, %130 : vector<8x32xf32>
    %132 = arith.addf %128, %131 : vector<8x32xf32>
    %133 = math.tanh %132 : vector<8x32xf32>
    %cst_29 = arith.constant 1.000000e+00 : f32
    %134 = vector.broadcast %cst_29 : f32 to vector<8x32xf32>
    %135 = arith.subf %134, %127 : vector<8x32xf32>
    %136 = arith.mulf %135, %133 : vector<8x32xf32>
    %137 = arith.mulf %127, %112 : vector<8x32xf32>
    %138 = arith.addf %136, %137 : vector<8x32xf32>
    %139 = vector.extract_strided_slice %5 {offsets = [40, 0], sizes = [8, 128], strides = [1, 1]} : vector<64x128xf32> to vector<8x128xf32>
    %cst_30 = arith.constant dense<0.000000e+00> : vector<8x128xf32>
    %140 = tpu.matmul %138, %6, %cst_30 {dimension_numbers = #tpu.dot_dimension_numbers<[1], [0], [0], [1], [0, 0, 1, 1], [], []>} : vector<8x32xf32>, vector<32x128xf32>, vector<8x128xf32> -> vector<8x128xf32>
    %141 = arith.addf %139, %140 : vector<8x128xf32>
    %142 = vector.extract_strided_slice %141 {offsets = [0, 0], sizes = [8, 32], strides = [1, 1]} : vector<8x128xf32> to vector<8x32xf32>
    %143 = arith.negf %142 : vector<8x32xf32>
    %144 = math.exp %143 : vector<8x32xf32>
    %cst_31 = arith.constant 1.000000e+00 : f32
    %145 = vector.broadcast %cst_31 : f32 to vector<8x32xf32>
    %146 = arith.addf %145, %144 : vector<8x32xf32>
    %147 = arith.divf %145, %146 : vector<8x32xf32>
    %148 = vector.extract_strided_slice %141 {offsets = [0, 32], sizes = [8, 32], strides = [1, 1]} : vector<8x128xf32> to vector<8x32xf32>
    %149 = arith.negf %148 : vector<8x32xf32>
    %150 = math.exp %149 : vector<8x32xf32>
    %cst_32 = arith.constant 1.000000e+00 : f32
    %151 = vector.broadcast %cst_32 : f32 to vector<8x32xf32>
    %152 = arith.addf %151, %150 : vector<8x32xf32>
    %153 = arith.divf %151, %152 : vector<8x32xf32>
    %154 = vector.extract_strided_slice %139 {offsets = [0, 64], sizes = [8, 32], strides = [1, 1]} : vector<8x128xf32> to vector<8x32xf32>
    %155 = vector.extract_strided_slice %140 {offsets = [0, 64], sizes = [8, 32], strides = [1, 1]} : vector<8x128xf32> to vector<8x32xf32>
    %156 = arith.addf %155, %7 : vector<8x32xf32>
    %157 = arith.mulf %147, %156 : vector<8x32xf32>
    %158 = arith.addf %154, %157 : vector<8x32xf32>
    %159 = math.tanh %158 : vector<8x32xf32>
    %cst_33 = arith.constant 1.000000e+00 : f32
    %160 = vector.broadcast %cst_33 : f32 to vector<8x32xf32>
    %161 = arith.subf %160, %153 : vector<8x32xf32>
    %162 = arith.mulf %161, %159 : vector<8x32xf32>
    %163 = arith.mulf %153, %138 : vector<8x32xf32>
    %164 = arith.addf %162, %163 : vector<8x32xf32>
    %165 = vector.extract_strided_slice %5 {offsets = [48, 0], sizes = [8, 128], strides = [1, 1]} : vector<64x128xf32> to vector<8x128xf32>
    %cst_34 = arith.constant dense<0.000000e+00> : vector<8x128xf32>
    %166 = tpu.matmul %164, %6, %cst_34 {dimension_numbers = #tpu.dot_dimension_numbers<[1], [0], [0], [1], [0, 0, 1, 1], [], []>} : vector<8x32xf32>, vector<32x128xf32>, vector<8x128xf32> -> vector<8x128xf32>
    %167 = arith.addf %165, %166 : vector<8x128xf32>
    %168 = vector.extract_strided_slice %167 {offsets = [0, 0], sizes = [8, 32], strides = [1, 1]} : vector<8x128xf32> to vector<8x32xf32>
    %169 = arith.negf %168 : vector<8x32xf32>
    %170 = math.exp %169 : vector<8x32xf32>
    %cst_35 = arith.constant 1.000000e+00 : f32
    %171 = vector.broadcast %cst_35 : f32 to vector<8x32xf32>
    %172 = arith.addf %171, %170 : vector<8x32xf32>
    %173 = arith.divf %171, %172 : vector<8x32xf32>
    %174 = vector.extract_strided_slice %167 {offsets = [0, 32], sizes = [8, 32], strides = [1, 1]} : vector<8x128xf32> to vector<8x32xf32>
    %175 = arith.negf %174 : vector<8x32xf32>
    %176 = math.exp %175 : vector<8x32xf32>
    %cst_36 = arith.constant 1.000000e+00 : f32
    %177 = vector.broadcast %cst_36 : f32 to vector<8x32xf32>
    %178 = arith.addf %177, %176 : vector<8x32xf32>
    %179 = arith.divf %177, %178 : vector<8x32xf32>
    %180 = vector.extract_strided_slice %165 {offsets = [0, 64], sizes = [8, 32], strides = [1, 1]} : vector<8x128xf32> to vector<8x32xf32>
    %181 = vector.extract_strided_slice %166 {offsets = [0, 64], sizes = [8, 32], strides = [1, 1]} : vector<8x128xf32> to vector<8x32xf32>
    %182 = arith.addf %181, %7 : vector<8x32xf32>
    %183 = arith.mulf %173, %182 : vector<8x32xf32>
    %184 = arith.addf %180, %183 : vector<8x32xf32>
    %185 = math.tanh %184 : vector<8x32xf32>
    %cst_37 = arith.constant 1.000000e+00 : f32
    %186 = vector.broadcast %cst_37 : f32 to vector<8x32xf32>
    %187 = arith.subf %186, %179 : vector<8x32xf32>
    %188 = arith.mulf %187, %185 : vector<8x32xf32>
    %189 = arith.mulf %179, %164 : vector<8x32xf32>
    %190 = arith.addf %188, %189 : vector<8x32xf32>
    %191 = vector.extract_strided_slice %5 {offsets = [56, 0], sizes = [8, 128], strides = [1, 1]} : vector<64x128xf32> to vector<8x128xf32>
    %cst_38 = arith.constant dense<0.000000e+00> : vector<8x128xf32>
    %192 = tpu.matmul %190, %6, %cst_38 {dimension_numbers = #tpu.dot_dimension_numbers<[1], [0], [0], [1], [0, 0, 1, 1], [], []>} : vector<8x32xf32>, vector<32x128xf32>, vector<8x128xf32> -> vector<8x128xf32>
    %193 = arith.addf %191, %192 : vector<8x128xf32>
    %194 = vector.extract_strided_slice %193 {offsets = [0, 0], sizes = [8, 32], strides = [1, 1]} : vector<8x128xf32> to vector<8x32xf32>
    %195 = arith.negf %194 : vector<8x32xf32>
    %196 = math.exp %195 : vector<8x32xf32>
    %cst_39 = arith.constant 1.000000e+00 : f32
    %197 = vector.broadcast %cst_39 : f32 to vector<8x32xf32>
    %198 = arith.addf %197, %196 : vector<8x32xf32>
    %199 = arith.divf %197, %198 : vector<8x32xf32>
    %200 = vector.extract_strided_slice %193 {offsets = [0, 32], sizes = [8, 32], strides = [1, 1]} : vector<8x128xf32> to vector<8x32xf32>
    %201 = arith.negf %200 : vector<8x32xf32>
    %202 = math.exp %201 : vector<8x32xf32>
    %cst_40 = arith.constant 1.000000e+00 : f32
    %203 = vector.broadcast %cst_40 : f32 to vector<8x32xf32>
    %204 = arith.addf %203, %202 : vector<8x32xf32>
    %205 = arith.divf %203, %204 : vector<8x32xf32>
    %206 = vector.extract_strided_slice %191 {offsets = [0, 64], sizes = [8, 32], strides = [1, 1]} : vector<8x128xf32> to vector<8x32xf32>
    %207 = vector.extract_strided_slice %192 {offsets = [0, 64], sizes = [8, 32], strides = [1, 1]} : vector<8x128xf32> to vector<8x32xf32>
    %208 = arith.addf %207, %7 : vector<8x32xf32>
    %209 = arith.mulf %199, %208 : vector<8x32xf32>
    %210 = arith.addf %206, %209 : vector<8x32xf32>
    %211 = math.tanh %210 : vector<8x32xf32>
    %cst_41 = arith.constant 1.000000e+00 : f32
    %212 = vector.broadcast %cst_41 : f32 to vector<8x32xf32>
    %213 = arith.subf %212, %205 : vector<8x32xf32>
    %214 = arith.mulf %213, %211 : vector<8x32xf32>
    %215 = arith.mulf %205, %190 : vector<8x32xf32>
    %216 = arith.addf %214, %215 : vector<8x32xf32>
    %c0_42 = arith.constant 0 : index
    %c0_43 = arith.constant 0 : index
    %217 = vector.load %arg5[%c0_42, %c0_43] : memref<32x128xf32, #tpu.memory_space<vmem>>, vector<32x128xf32>
    %cst_44 = arith.constant dense<0.000000e+00> : vector<8x128xf32>
    %218 = tpu.matmul %216, %217, %cst_44 {dimension_numbers = #tpu.dot_dimension_numbers<[1], [0], [0], [1], [0, 0, 1, 1], [], []>} : vector<8x32xf32>, vector<32x128xf32>, vector<8x128xf32> -> vector<8x128xf32>
    %c0_45 = arith.constant 0 : index
    %c0_46 = arith.constant 0 : index
    %219 = vector.load %arg6[%c0_45, %c0_46] : memref<1x128xf32, #tpu.memory_space<vmem>>, vector<1x128xf32>
    %220 = vector.broadcast %219 : vector<1x128xf32> to vector<8x128xf32>
    %221 = arith.addf %218, %220 : vector<8x128xf32>
    %222 = arith.negf %221 : vector<8x128xf32>
    %223 = math.exp %222 : vector<8x128xf32>
    %cst_47 = arith.constant 1.000000e+00 : f32
    %224 = vector.broadcast %cst_47 : f32 to vector<8x128xf32>
    %225 = arith.addf %224, %223 : vector<8x128xf32>
    %226 = arith.divf %224, %225 : vector<8x128xf32>
    %c0_48 = arith.constant 0 : index
    %c0_49 = arith.constant 0 : index
    %227 = vector.load %arg7[%c0_48, %c0_49] : memref<8x128xf32, #tpu.memory_space<vmem>>, vector<8x128xf32>
    tpu.vector_store %arg7[%c0_48, %c0_49], %226 {strides = array<i32>} : memref<8x128xf32, #tpu.memory_space<vmem>>, vector<8x128xf32>,
    return
  }
}

</mosaic_0001>

<bundles_post_ra>
// kernel: tpu_custom_call.1
= control target key start
LH: loop header
LB: loop body
LE: loop exit
PB: predicated region body
PF: predicated region fallthrough
CT: control target
= control target key end

     0   :  { %vm44_vm0 = vcmask 130048   ;;  %v1442_v3 = vmov 0.0|0.0   ;;  %vm1443_vm1 = vmmov 0   ;;  %v1444_v10 = vmov 0.0   ;;  %s1445_s16 = smov 64   ;;  %s1701_s0 = inlined_call_operand.vmem [shape: f32[64,16], index: 0, kind: input, shape index: {}]   ;;  %s1702_s1 = inlined_call_operand.vmem [shape: f32[16,128], index: 1, kind: input, shape index: {}]   ;;  %s1703_s2 = inlined_call_operand.vmem [shape: f32[32,128], index: 2, kind: input, shape index: {}]   ;;  %s1704_s3 = inlined_call_operand.vmem [shape: f32[1,128], index: 3, kind: input, shape index: {}]   ;;  %s1705_s4 = inlined_call_operand.vmem [shape: f32[8,32], index: 4, kind: input, shape index: {}]   ;;  %s1706_s5 = inlined_call_operand.vmem [shape: f32[32,128], index: 5, kind: input, shape index: {}]   ;;  %s1707_s6 = inlined_call_operand.vmem [shape: f32[1,128], index: 6, kind: input, shape index: {}]   ;;  %s1708_s7 = inlined_call_operand.hbm [shape: f32[8,128], index: 7, kind: output, shape index: {}]  }
   0x1   :  { %v35_v0 = vld [vmem:[%s1702_s1] sm:$0xff]  ;;  %v36_v1 = vld [vmem:[%s1702_s1 + $0x8] sm:$0xff]  ;;  %1306 = vmatprep.subr.bf16.mxu1 %v1442_v3  ;;  %v176_v8 = vld [vmem:[%s1703_s2 + $0x10] sm:$0xff]  ;;  %1211 = vmatprep.mubr.msk.f32.mxu1 %vm1443_vm1, %v1444_v10 }
   0x2   :  { %v174_v2 = vld [vmem:[%s1703_s2] sm:$0xff]  ;;  %v1302_v4 = vpack.c.bf16 %v36_v1, %v35_v0  ;;  %v175_v5 = vld [vmem:[%s1703_s2 + $0x8] sm:$0xff]  ;;  %v177_v9 = vld [vmem:[%s1703_s2 + $0x18] sm:$0xff] }
   0x3   :  { %v27_v6 = vld [vmem:[%s1701_s0] sm:$0xff]  ;;  %v1504_v7 = vpack.c.bf16 %v175_v5, %v174_v2 }
   0x4   :  { %1191 = vmatprep.mubr.msk.f32.mxu0 %vm44_vm0, %v27_v6  ;;  %v178_v11 = vld [vmem:[%s1705_s4] sm:$0xff]  ;;  %1303 = vmatprep.subr.bf16.mxu0 %v1302_v4 }
   0x5   :  { %261 = vrot.lane.b32.xlu0 %v178_v11, %s1445_s16 }
   0x6   :  { %12 = vsyncpa [#allocation3], 0  ;;  %1308 = vmatpush3.bf16.msra.mxu1 %v1504_v7  ;;  %1305 = vmatpush3.bf16.msra.mxu0 %v1302_v4  ;;  %v28_v12 = vld [vmem:[%s1701_s0 + $0x8] sm:$0xff]  ;;  %v1523_v13 = vpack.c.bf16 %v177_v9, %v176_v8  ;;  %v1548_v20 = vld [vmem:[%s1704_s3] ss:$0 sm:$0xff]  ;;  %s1446_s19 = smov 96  }
   0x7   :  { %1309 = vmatprep.subr.bf16.mxu1 %v1442_v3  ;;  %1318 = vmatprep.subr.bf16.mxu0 %v1442_v3  ;;  %vm179_vm2 = vcmask 261120   ;;  %v29_v51 = vld [vmem:[%s1701_s0 + $0x10] sm:$0xff]  ;;  %v30_v52 = vld [vmem:[%s1701_s0 + $0x18] sm:$0xff]  ;;  %v31_v53 = vld [vmem:[%s1701_s0 + $0x20] sm:$0xff]  ;;  %s1447_s15 = smov [#allocation2]  }
   0x8   :  { %v32_v54 = vld [vmem:[%s1701_s0 + $0x28] sm:$0xff]  ;;  %v33_v55 = vld [vmem:[%s1701_s0 + $0x30] sm:$0xff]  ;;  %v34_v56 = vld [vmem:[%s1701_s0 + $0x38] sm:$0xff] }
   0x9   :  { %1192 = vmatmul.mubr.msk.f32.vlgmr.msra.gmra.mrb[0].mxu0 %vm44_vm0, %v28_v12 }
   0xa   :  { %1311 = vmatpush3.bf16.msra.mxu1 %v1523_v13  ;;  %1320 = vmatpush3.bf16.msra.mxu0 %v1504_v7 }
   0xb   :  { %1312 = vmatprep.subr.bf16.mxu1 %v1442_v3  ;;  %1321 = vmatprep.subr.bf16.mxu0 %v1442_v3 }
   0xc   :  { %1194 = vmatprep.mubr.msk.f32.mxu0 %vm44_vm0, %v29_v51 }
   0xd   :  { %1212 = vmatmul.mubr.f32.vlgmr.msra.gmra.mrb[0].mxu1 %v1444_v10  ;;  %1195 = vmatmul.mubr.msk.f32.gmra.mrb[2].mxu0 %vm44_vm0, %v30_v52 }
   0xe   :  { %1314 = vmatpush3.bf16.msra.mxu1 %v1504_v7  ;;  %1222 = vmatprep.mubr.msk.f32.mxu1 %vm1443_vm1, %v1444_v10 }
   0xf   :  { %1315 = vmatprep.subr.bf16.mxu1 %v1442_v3  ;;  %1323 = vmatpush3.bf16.msra.mxu0 %v1523_v13 }
  0x10   :  { %1330 = vmatprep.subr.bf16.mxu0 %v1442_v3  ;;  %1197 = vmatprep.mubr.msk.f32.mxu0 %vm44_vm0, %v31_v53 }
  0x11   :  { %1198 = vmatmul.mubr.msk.f32.gmra.mrb[4].mxu0 %vm44_vm0, %v32_v54 }
  0x12   :  { %1317 = vmatpush3.bf16.msra.mxu1 %v1523_v13  ;;  %1200 = vmatprep.mubr.msk.f32.mxu0 %vm44_vm0, %v33_v55 }
  0x13   :  { %1324 = vmatprep.subr.bf16.mxu1 %v1442_v3 }
  0x15   :  { %1201 = vmatmul.mubr.msk.f32.gmra.mrb[6].mxu0 %vm44_vm0, %v34_v56 }
  0x16   :  { %1233 = vmatprep.mubr.msk.f32.mxu0 %vm1443_vm1, %v1444_v10 }
  0x77   :  { %v1541_v16 = vpop.permute.xlu0 %261 }
  0xdc   :  { %v1193_v14 = vpop.f32.mrb[0].mxu0 }
  0xdd   :  { %v135_v15 = vpop.f32.mrb[1].mxu0  ;;  %v141_v41 = vadd.f32 %v1193_v14, %v1548_v20 }
  0xde   :  { %v136_v21 = vadd.f32 %v1548_v20, %v135_v15 }
  0xe0   :  { %v249_v17 = vpop.f32.mrb[0].mxu1  ;;  %v1196_v63 = vpop.f32.mrb[2].mxu0 }
  0xe1   :  { %v264_v18 = vadd.f32 %v1541_v16, %v249_v17  ;;  %v1213_v19 = vpop.f32.mrb[1].mxu1  ;;  %v253_v22 = vadd.f32 %v249_v17, %v136_v21  ;;  %v145_v0 = vpop.f32.mrb[3].mxu0 }
  0xe2   :  { %v146_v12 = vadd.f32 %v1548_v20, %v145_v0 }
  0xe3   :  { %266 = vrot.lane.b32.xlu0 %v264_v18, %s1445_s16  ;;  %v1114_v23 = vmul.f32 -1.442695, %v253_v22 }
  0xe4   :  { %v1593_v1 = vpop.f32.mrb[4].mxu0 }
  0xe5   :  { %1366 = vpow2.f32 %v1114_v23  ;;  %v1595_v2 = vpop.f32.mrb[5].mxu0 }
  0xe6   :  { %v156_v55 = vadd.f32 %v1548_v20, %v1595_v2 }
  0xe8   :  { %v1597_v4 = vpop.f32.mrb[6].mxu0 }
  0xe9   :  { %v1599_v5 = vpop.f32.mrb[7].mxu0 }
  0xef   :  { %v1367_v24 = vpop.eup %1366 }
  0xf0   :  { %v257_v25 = vadd.f32 1.0, %v1367_v24 }
  0xf2   :  { %1368 = vrcp.f32 %v257_v25 }
  0xfc   :  { %v1369_v26 = vpop.eup %1368 }
  0xfd   :  { %v276_v32 = vsub.f32 1.0, %v1369_v26  ;;  %v282_v34 = vmul.f32 0.0, %v1369_v26 }
 0x155   :  { %v267_v27 = vpop.permute.xlu0 %266 }
 0x156   :  { %v269_v28 = vmul.f32 %v1369_v26, %v267_v27 }
 0x158   :  { %271 = vrot.lane.b32.xlu1 %v269_v28, %s1445_s16 }
 0x1ca   :  { %v272_v29 = vpop.permute.xlu1 %271 }
 0x1cb   :  { %v274_v30 = vadd.f32 %v272_v29, %v136_v21 }
 0x1cd   :  { %1370 = vtanh.f32 %v274_v30 }
 0x1d7   :  { %v1371_v31 = vpop.eup %1370 }
 0x1d8   :  { %278 = vrot.lane.b32.xlu1 %v1371_v31, %s1446_s19 }
 0x24a   :  { %v279_v33 = vpop.permute.xlu1 %278 }
 0x24b   :  { %v281_v35 = vmul.f32 %v279_v33, %v276_v32 }
 0x24d   :  { %v283_v36 = vadd.f32 %v282_v34, %v281_v35  ;;  %v151_v35 = vadd.f32 %v1196_v63, %v1548_v20 }
 0x24f   :  { %285 = vrot.lane.b32.xlu0 %v283_v36, %s1446_s19 }
 0x2c1   :  { %v286_v37 = vpop.permute.xlu0 %285 }
 0x2c2   :  { %1223 = vmatmul.mubr.msk.f32.vlgmr.msra.gmra.mrb[2].mxu1 %vm179_vm2, %v286_v37 }
 0x2c3   :  { %1326 = vmatpush3.bf16.msra.mxu1 %v1504_v7  ;;  %1244 = vmatprep.mubr.msk.f32.mxu1 %vm1443_vm1, %v1444_v10 }
 0x2c4   :  { %1327 = vmatprep.subr.bf16.mxu1 %v1442_v3 }
 0x2c7   :  { %1329 = vmatpush3.bf16.msra.mxu1 %v1523_v13 }
 0x2c8   :  { %1336 = vmatprep.subr.bf16.mxu1 %v1442_v3 }
 0x395   :  { %v355_v38 = vpop.f32.mrb[2].mxu1 }
 0x396   :  { %v366_v39 = vadd.f32 %v355_v38, %v1541_v16  ;;  %v1224_v40 = vpop.f32.mrb[3].mxu1  ;;  %v359_v42 = vadd.f32 %v355_v38, %v141_v41 }
 0x398   :  { %368 = vrot.lane.b32.xlu1 %v366_v39, %s1445_s16  ;;  %v1116_v43 = vmul.f32 -1.442695, %v359_v42 }
 0x39a   :  { %1372 = vpow2.f32 %v1116_v43 }
 0x3a4   :  { %v1373_v44 = vpop.eup %1372 }
 0x3a5   :  { %v363_v45 = vadd.f32 1.0, %v1373_v44 }
 0x3a7   :  { %1374 = vrcp.f32 %v363_v45 }
 0x3b1   :  { %v1375_v46 = vpop.eup %1374 }
 0x3b2   :  { %v378_v58 = vsub.f32 1.0, %v1375_v46  ;;  %v384_v60 = vmul.f32 %v1375_v46, %v283_v36 }
 0x40a   :  { %v369_v47 = vpop.permute.xlu1 %368 }
 0x40b   :  { %v371_v48 = vmul.f32 %v1375_v46, %v369_v47 }
 0x40d   :  { %373 = vrot.lane.b32.xlu0 %v371_v48, %s1445_s16 }
 0x47f   :  { %v374_v49 = vpop.permute.xlu0 %373 }
 0x480   :  { %v376_v50 = vadd.f32 %v374_v49, %v141_v41 }
 0x482   :  { %1376 = vtanh.f32 %v376_v50 }
 0x48c   :  { %v1377_v57 = vpop.eup %1376 }
 0x48d   :  { %380 = vrot.lane.b32.xlu1 %v1377_v57, %s1446_s19 }
 0x4ff   :  { %v381_v59 = vpop.permute.xlu1 %380 }
 0x500   :  { %v383_v61 = vmul.f32 %v381_v59, %v378_v58 }
 0x502   :  { %v385_v62 = vadd.f32 %v384_v60, %v383_v61 }
 0x504   :  { %387 = vrot.lane.b32.xlu0 %v385_v62, %s1446_s19 }
 0x576   :  { %v388_v6 = vpop.permute.xlu0 %387 }
 0x577   :  { %1234 = vmatmul.mubr.msk.f32.vlgmr.msra.gmra.mrb[8].mxu0 %vm179_vm2, %v388_v6 }
 0x578   :  { %1332 = vmatpush3.bf16.msra.mxu0 %v1504_v7  ;;  %1255 = vmatprep.mubr.msk.f32.mxu0 %vm1443_vm1, %v1444_v10 }
 0x579   :  { %1333 = vmatprep.subr.bf16.mxu0 %v1442_v3 }
 0x57c   :  { %1335 = vmatpush3.bf16.msra.mxu0 %v1523_v13 }
 0x57d   :  { %1342 = vmatprep.subr.bf16.mxu0 %v1442_v3 }
 0x64a   :  { %v457_v8 = vpop.f32.mrb[8].mxu0 }
 0x64b   :  { %v468_v9 = vadd.f32 %v457_v8, %v1541_v16  ;;  %v1235_v11 = vpop.f32.mrb[9].mxu0  ;;  %v461_v14 = vadd.f32 %v457_v8, %v146_v12 }
 0x64d   :  { %470 = vrot.lane.b32.xlu1 %v468_v9, %s1445_s16  ;;  %v1118_v15 = vmul.f32 -1.442695, %v461_v14 }
 0x64f   :  { %1378 = vpow2.f32 %v1118_v15 }
 0x659   :  { %v1379_v17 = vpop.eup %1378 }
 0x65a   :  { %v465_v18 = vadd.f32 1.0, %v1379_v17 }
 0x65c   :  { %1380 = vrcp.f32 %v465_v18 }
 0x666   :  { %v1381_v19 = vpop.eup %1380 }
 0x667   :  { %v480_v26 = vsub.f32 1.0, %v1381_v19  ;;  %v486_v28 = vmul.f32 %v1381_v19, %v385_v62 }
 0x6bf   :  { %v471_v21 = vpop.permute.xlu1 %470 }
 0x6c0   :  { %v473_v22 = vmul.f32 %v1381_v19, %v471_v21  ;;  %v161_v19 = vadd.f32 %v1593_v1, %v1548_v20 }
 0x6c2   :  { %475 = vrot.lane.b32.xlu0 %v473_v22, %s1445_s16 }
 0x734   :  { %v476_v23 = vpop.permute.xlu0 %475 }
 0x735   :  { %v478_v24 = vadd.f32 %v476_v23, %v146_v12 }
 0x737   :  { %1382 = vtanh.f32 %v478_v24 }
 0x741   :  { %v1383_v25 = vpop.eup %1382 }
 0x742   :  { %482 = vrot.lane.b32.xlu1 %v1383_v25, %s1446_s19 }
 0x7b4   :  { %v483_v27 = vpop.permute.xlu1 %482 }
 0x7b5   :  { %v485_v29 = vmul.f32 %v483_v27, %v480_v26 }
 0x7b7   :  { %v487_v30 = vadd.f32 %v486_v28, %v485_v29 }
 0x7b9   :  { %489 = vrot.lane.b32.xlu0 %v487_v30, %s1446_s19 }
 0x82b   :  { %v490_v31 = vpop.permute.xlu0 %489 }
 0x82c   :  { %1245 = vmatmul.mubr.msk.f32.vlgmr.msra.gmra.mrb[4].mxu1 %vm179_vm2, %v490_v31 }
 0x82d   :  { %1338 = vmatpush3.bf16.msra.mxu1 %v1504_v7  ;;  %1266 = vmatprep.mubr.msk.f32.mxu1 %vm1443_vm1, %v1444_v10 }
 0x82e   :  { %1339 = vmatprep.subr.bf16.mxu1 %v1442_v3 }
 0x831   :  { %1341 = vmatpush3.bf16.msra.mxu1 %v1523_v13 }
 0x832   :  { %1348 = vmatprep.subr.bf16.mxu1 %v1442_v3 }
 0x8ff   :  { %v559_v32 = vpop.f32.mrb[4].mxu1 }
 0x900   :  { %v570_v33 = vadd.f32 %v559_v32, %v1541_v16  ;;  %v1246_v34 = vpop.f32.mrb[5].mxu1  ;;  %v563_v36 = vadd.f32 %v559_v32, %v151_v35 }
 0x902   :  { %572 = vrot.lane.b32.xlu1 %v570_v33, %s1445_s16  ;;  %v1120_v37 = vmul.f32 -1.442695, %v563_v36 }
 0x904   :  { %1384 = vpow2.f32 %v1120_v37  ;;  %v166_v37 = vadd.f32 %v1548_v20, %v1599_v5 }
 0x90e   :  { %v1385_v38 = vpop.eup %1384 }
 0x90f   :  { %v567_v39 = vadd.f32 1.0, %v1385_v38 }
 0x911   :  { %1386 = vrcp.f32 %v567_v39 }
 0x91b   :  { %v1387_v40 = vpop.eup %1386 }
 0x91c   :  { %v582_v46 = vsub.f32 1.0, %v1387_v40  ;;  %v588_v48 = vmul.f32 %v1387_v40, %v487_v30 }
 0x974   :  { %v573_v41 = vpop.permute.xlu1 %572 }
 0x975   :  { %v575_v42 = vmul.f32 %v1387_v40, %v573_v41 }
 0x977   :  { %577 = vrot.lane.b32.xlu0 %v575_v42, %s1445_s16 }
 0x9e9   :  { %v578_v43 = vpop.permute.xlu0 %577 }
 0x9ea   :  { %v580_v44 = vadd.f32 %v578_v43, %v151_v35 }
 0x9ec   :  { %1388 = vtanh.f32 %v580_v44 }
 0x9f6   :  { %v1389_v45 = vpop.eup %1388 }
 0x9f7   :  { %584 = vrot.lane.b32.xlu1 %v1389_v45, %s1446_s19 }
 0xa69   :  { %v585_v47 = vpop.permute.xlu1 %584 }
 0xa6a   :  { %v587_v49 = vmul.f32 %v585_v47, %v582_v46 }
 0xa6c   :  { %v589_v50 = vadd.f32 %v588_v48, %v587_v49 }
 0xa6e   :  { %591 = vrot.lane.b32.xlu0 %v589_v50, %s1446_s19 }
 0xae0   :  { %v592_v51 = vpop.permute.xlu0 %591 }
 0xae1   :  { %1256 = vmatmul.mubr.msk.f32.vlgmr.msra.gmra.mrb[10].mxu0 %vm179_vm2, %v592_v51 }
 0xae2   :  { %1344 = vmatpush3.bf16.msra.mxu0 %v1504_v7  ;;  %1277 = vmatprep.mubr.msk.f32.mxu0 %vm1443_vm1, %v1444_v10 }
 0xae3   :  { %1345 = vmatprep.subr.bf16.mxu0 %v1442_v3 }
 0xae6   :  { %1347 = vmatpush3.bf16.msra.mxu0 %v1523_v13 }
 0xae7   :  { %1354 = vmatprep.subr.bf16.mxu0 %v1442_v3 }
 0xbb4   :  { %v661_v52 = vpop.f32.mrb[10].mxu0 }
 0xbb5   :  { %v672_v53 = vadd.f32 %v661_v52, %v1541_v16  ;;  %v1257_v54 = vpop.f32.mrb[11].mxu0  ;;  %v665_v56 = vadd.f32 %v661_v52, %v156_v55 }
 0xbb7   :  { %674 = vrot.lane.b32.xlu1 %v672_v53, %s1445_s16  ;;  %v1122_v57 = vmul.f32 -1.442695, %v665_v56 }
 0xbb9   :  { %1390 = vpow2.f32 %v1122_v57 }
 0xbc3   :  { %v1391_v58 = vpop.eup %1390 }
 0xbc4   :  { %v669_v59 = vadd.f32 1.0, %v1391_v58 }
 0xbc6   :  { %1392 = vrcp.f32 %v669_v59 }
 0xbd0   :  { %v1393_v60 = vpop.eup %1392 }
 0xbd1   :  { %v684_v8 = vsub.f32 1.0, %v1393_v60  ;;  %v690_v2 = vmul.f32 %v1393_v60, %v589_v50 }
 0xc29   :  { %v675_v61 = vpop.permute.xlu1 %674 }
 0xc2a   :  { %v677_v62 = vmul.f32 %v1393_v60, %v675_v61 }
 0xc2c   :  { %679 = vrot.lane.b32.xlu0 %v677_v62, %s1445_s16 }
 0xc9e   :  { %v680_v63 = vpop.permute.xlu0 %679 }
 0xc9f   :  { %v682_v0 = vadd.f32 %v680_v63, %v156_v55  ;;  %v171_v55 = vadd.f32 %v1597_v4, %v1548_v20  ;;  %v999_v20 = vld [vmem:[%s1706_s5 + $0x8] sm:$0xff]  ;;  %v1000_v4 = vld [vmem:[%s1706_s5 + $0x10] sm:$0xff] }
 0xca1   :  { %1394 = vtanh.f32 %v682_v0 }
 0xcab   :  { %v1395_v6 = vpop.eup %1394 }
 0xcac   :  { %686 = vrot.lane.b32.xlu1 %v1395_v6, %s1446_s19 }
 0xd1e   :  { %v687_v9 = vpop.permute.xlu1 %686 }
 0xd1f   :  { %v689_v11 = vmul.f32 %v687_v9, %v684_v8  ;;  %v1001_v8 = vld [vmem:[%s1706_s5 + $0x18] sm:$0xff] }
 0xd20   :  { %v1358_v9 = vpack.c.bf16 %v1001_v8, %v1000_v4 }
 0xd21   :  { %v691_v12 = vadd.f32 %v690_v2, %v689_v11 }
 0xd23   :  { %693 = vrot.lane.b32.xlu0 %v691_v12, %s1446_s19 }
 0xd95   :  { %v694_v14 = vpop.permute.xlu0 %693 }
 0xd96   :  { %1267 = vmatmul.mubr.msk.f32.vlgmr.msra.gmra.mrb[6].mxu1 %vm179_vm2, %v694_v14 }
 0xd97   :  { %1350 = vmatpush3.bf16.msra.mxu1 %v1504_v7  ;;  %1288 = vmatprep.mubr.msk.f32.mxu1 %vm1443_vm1, %v1444_v10 }
 0xd98   :  { %1351 = vmatprep.subr.bf16.mxu1 %v1442_v3 }
 0xd9b   :  { %1353 = vmatpush3.bf16.msra.mxu1 %v1523_v13 }
 0xe69   :  { %v763_v15 = vpop.f32.mrb[6].mxu1 }
 0xe6a   :  { %v774_v17 = vadd.f32 %v763_v15, %v1541_v16  ;;  %v1268_v18 = vpop.f32.mrb[7].mxu1  ;;  %v767_v21 = vadd.f32 %v763_v15, %v161_v19 }
 0xe6c   :  { %776 = vrot.lane.b32.xlu1 %v774_v17, %s1445_s16  ;;  %v1124_v22 = vmul.f32 -1.442695, %v767_v21 }
 0xe6e   :  { %1396 = vpow2.f32 %v1124_v22 }
 0xe78   :  { %v1397_v7 = vpop.eup %1396 }
 0xe79   :  { %v771_v23 = vadd.f32 1.0, %v1397_v7 }
 0xe7b   :  { %1398 = vrcp.f32 %v771_v23 }
 0xe85   :  { %v1399_v24 = vpop.eup %1398 }
 0xe86   :  { %v786_v29 = vsub.f32 1.0, %v1399_v24  ;;  %v792_v1 = vmul.f32 %v1399_v24, %v691_v12 }
 0xede   :  { %v777_v25 = vpop.permute.xlu1 %776 }
 0xedf   :  { %v779_v26 = vmul.f32 %v1399_v24, %v777_v25 }
 0xee1   :  { %781 = vrot.lane.b32.xlu0 %v779_v26, %s1445_s16 }
 0xf53   :  { %v782_v13 = vpop.permute.xlu0 %781 }
 0xf54   :  { %v784_v27 = vadd.f32 %v782_v13, %v161_v19  ;;  %v1129_v19 = vld [vmem:[%s1707_s6] ss:$0 sm:$0xff] }
 0xf56   :  { %1400 = vtanh.f32 %v784_v27 }
 0xf60   :  { %v1401_v28 = vpop.eup %1400 }
 0xf61   :  { %788 = vrot.lane.b32.xlu1 %v1401_v28, %s1446_s19 }
 0xfd3   :  { %v789_v30 = vpop.permute.xlu1 %788 }
 0xfd4   :  { %v791_v31 = vmul.f32 %v789_v30, %v786_v29 }
 0xfd6   :  { %v793_v32 = vadd.f32 %v792_v1, %v791_v31 }
 0xfd8   :  { %795 = vrot.lane.b32.xlu0 %v793_v32, %s1446_s19 }
0x104a   :  { %v796_v33 = vpop.permute.xlu0 %795 }
0x104b   :  { %1278 = vmatmul.mubr.msk.f32.vlgmr.msra.gmra.mrb[12].mxu0 %vm179_vm2, %v796_v33 }
0x104c   :  { %1299 = vmatprep.mubr.msk.f32.mxu0 %vm1443_vm1, %v1444_v10 }
0x111e   :  { %v865_v34 = vpop.f32.mrb[12].mxu0 }
0x111f   :  { %v876_v35 = vadd.f32 %v865_v34, %v1541_v16  ;;  %v1279_v36 = vpop.f32.mrb[13].mxu0  ;;  %v869_v38 = vadd.f32 %v865_v34, %v166_v37 }
0x1121   :  { %878 = vrot.lane.b32.xlu1 %v876_v35, %s1445_s16  ;;  %v1126_v39 = vmul.f32 -1.442695, %v869_v38 }
0x1123   :  { %1402 = vpow2.f32 %v1126_v39 }
0x112d   :  { %v1403_v40 = vpop.eup %1402 }
0x112e   :  { %v873_v41 = vadd.f32 1.0, %v1403_v40 }
0x1130   :  { %1404 = vrcp.f32 %v873_v41 }
0x113a   :  { %v1405_v42 = vpop.eup %1404 }
0x113b   :  { %v888_v47 = vsub.f32 1.0, %v1405_v42  ;;  %v894_v5 = vmul.f32 %v1405_v42, %v793_v32 }
0x1193   :  { %v879_v43 = vpop.permute.xlu1 %878 }
0x1194   :  { %v881_v44 = vmul.f32 %v1405_v42, %v879_v43 }
0x1196   :  { %883 = vrot.lane.b32.xlu0 %v881_v44, %s1445_s16 }
0x1208   :  { %v884_v10 = vpop.permute.xlu0 %883 }
0x1209   :  { %v886_v45 = vadd.f32 %v884_v10, %v166_v37 }
0x120b   :  { %1406 = vtanh.f32 %v886_v45 }
0x1215   :  { %v1407_v46 = vpop.eup %1406 }
0x1216   :  { %890 = vrot.lane.b32.xlu1 %v1407_v46, %s1446_s19 }
0x1288   :  { %v891_v48 = vpop.permute.xlu1 %890 }
0x1289   :  { %v893_v49 = vmul.f32 %v891_v48, %v888_v47 }
0x128b   :  { %v895_v50 = vadd.f32 %v894_v5, %v893_v49 }
0x128d   :  { %897 = vrot.lane.b32.xlu0 %v895_v50, %s1446_s19 }
0x12ff   :  { %v898_v51 = vpop.permute.xlu0 %897 }
0x1300   :  { %1289 = vmatmul.mubr.msk.f32.vlgmr.msra.gmra.mrb[8].mxu1 %vm179_vm2, %v898_v51 }
0x13d3   :  { %v967_v52 = vpop.f32.mrb[8].mxu1 }
0x13d4   :  { %v978_v53 = vadd.f32 %v967_v52, %v1541_v16  ;;  %v1290_v54 = vpop.f32.mrb[9].mxu1  ;;  %v971_v56 = vadd.f32 %v967_v52, %v171_v55  ;;  %v998_v16 = vld [vmem:[%s1706_s5] sm:$0xff] }
0x13d5   :  { %v1355_v6 = vpack.c.bf16 %v999_v20, %v998_v16 }
0x13d6   :  { %980 = vrot.lane.b32.xlu1 %v978_v53, %s1445_s16  ;;  %v1128_v57 = vmul.f32 -1.442695, %v971_v56 }
0x13d7   :  { %1356 = vmatpush3.bf16.msra.mxu0 %v1355_v6 }
0x13d8   :  { %1408 = vpow2.f32 %v1128_v57  ;;  %1357 = vmatprep.subr.bf16.mxu0 %v1442_v3 }
0x13db   :  { %1359 = vmatpush3.bf16.msra.mxu0 %v1358_v9 }
0x13e2   :  { %v1409_v58 = vpop.eup %1408 }
0x13e3   :  { %v975_v59 = vadd.f32 1.0, %v1409_v58 }
0x13e5   :  { %1410 = vrcp.f32 %v975_v59 }
0x13ef   :  { %v1411_v60 = vpop.eup %1410 }
0x13f0   :  { %v990_v11 = vsub.f32 1.0, %v1411_v60  ;;  %v996_v14 = vmul.f32 %v1411_v60, %v895_v50 }
0x1448   :  { %v981_v61 = vpop.permute.xlu1 %980 }
0x1449   :  { %v983_v62 = vmul.f32 %v1411_v60, %v981_v61 }
0x144b   :  { %985 = vrot.lane.b32.xlu0 %v983_v62, %s1445_s16  ;;  %s1097_s16 = sshll.u32 %s1447_s15, 4  ;;  %s1098_s16 = int_to_ptr.vmem [resolvable:$true] %s1097_s16 }
0x144c   :  { %s1418_s17 = scalar_lea.vmem %s1098_s16, 128  ;;  %p1423_p1 = scmp.lt.s32.totalorder %s1098_s16, %s1098_s16 }
0x144d   :  { %p1419_p0 = scmp.ne.s32.totalorder %s1098_s16, %s1418_s17  ;;  %p1424_p2 = scmp.lt.s32.totalorder %s1418_s17, %s1418_s17 }
0x144f   :  { %p1425_p3 = por %p1424_p2, %p1423_p1 }
0x1451   :  { %p1426_p4 = pnand %p1425_p3, %p1419_p0 }
0x14bd   :  { %v986_v63 = vpop.permute.xlu0 %985 }
0x14be   :  { %v988_v0 = vadd.f32 %v986_v63, %v171_v55 }
0x14c0   :  { %1412 = vtanh.f32 %v988_v0 }
0x14ca   :  { %v1413_v2 = vpop.eup %1412 }
0x14cb   :  { %992 = vrot.lane.b32.xlu1 %v1413_v2, %s1446_s19 }
0x153d   :  { %v993_v12 = vpop.permute.xlu1 %992 }
0x153e   :  { %v995_v15 = vmul.f32 %v993_v12, %v990_v11 }
0x1540   :  { %v997_v17 = vadd.f32 %v996_v14, %v995_v15 }
0x1542   :  { %1010 = vrot.lane.b32.xlu0 %v997_v17, %s1446_s19 }
0x15b4   :  { %v1011_v18 = vpop.permute.xlu0 %1010 }
0x15b5   :  { %1300 = vmatmul.mubr.msk.f32.vlgmr.msra.gmra.mrb[14].mxu0 %vm179_vm2, %v1011_v18 }
0x1688   :  { %v1080_v21 = vpop.f32.mrb[14].mxu0 }
0x1689   :  { %v1081_v3 = vadd.f32 %v1129_v19, %v1080_v21  ;;  %v1301_v22 = vpop.f32.mrb[15].mxu0 }
0x168b   :  { %v1131_v7 = vmul.f32 -1.442695, %v1081_v3 }
0x168d   :  { %1414 = vpow2.f32 %v1131_v7 }
0x1697   :  { %v1415_v23 = vpop.eup %1414 }
0x1698   :  { %v1087_v24 = vadd.f32 1.0, %v1415_v23 }
0x169a   :  { %1416 = vrcp.f32 %v1087_v24 }
0x16a4   :  { %v1417_v25 = vpop.eup %1416 }
0x16a5   :  { %1090 = vst [vmem:[#allocation2] sm:$0xff] %v1417_v25 }
0x16a6   :  { %1429 = shalt.err (!%p1426_p4)
}
0x16a7   :  { %s1430_s2 = scalar_lea.hbm %s1708_s7, 128 }
0x16a8   :  { %p1431_p5 = scmp.ne.s32.totalorder %s1708_s7, %s1430_s2  ;;  %p1434_p6 = scmp.lt.u32.totalorder %s1430_s2, %s1708_s7 }
0x16aa   :  { %p1436_p7 = pnand %p1434_p6, %p1431_p5 }
0x16ac   :  { %1439 = shalt.err (!%p1436_p7)
}
0x16ad   :  { %1100 = dma.vmem_to_hbm [thread:$0]  %s1098_s16, 128, %s1708_s7, [#allocation3]  }
0x16ae   :  { %1440 = dma.done.wait [#allocation3], 128  }
0x16af   :  { %1441 = vsyncadd [#allocation3], 4294967168 }
0x16b0   :  { %1104 = vsyncpa [#allocation3], 1 }

</bundles_post_ra>
